<compile_context>
chip_gen: v6e
topology: v6e:2x2x1
jax: 0.10.0
libtpu: 0.0.40
codegen_flags: <defaults>
</compile_context>

<pallas_src>
import functools

import jax
import jax.numpy as jnp
from jax import lax
from jax.experimental import pallas as pl
from jax.experimental.pallas import tpu as pltpu


def _ce_class_accum_kernel(logits_ref, labels_ref, sum_ref, cnt_ref, *,
                           hw, blocks_per_split, need_mask):
    """Accumulate per-class CE-loss sums and pixel counts for one pixel block.

    logits_ref: (C, TP) float   logits; classes on sublanes, pixels on lanes
    labels_ref: (1, TP) int32   class index per pixel
    sum_ref:    (C, 1) float32  per-class loss sum    (resident accumulator)
    cnt_ref:    (C, 1) float32  per-class pixel count (resident accumulator;
                                exact while per-class counts stay < 2^24)
    """
    pi = pl.program_id(2)

    @pl.when(pi == 0)
    def _init():
        sum_ref[...] = jnp.zeros_like(sum_ref)
        cnt_ref[...] = jnp.zeros_like(cnt_ref)

    logits = logits_ref[...].astype(jnp.float32)           # (C, TP)
    labels = labels_ref[...]                                # (1, TP) int32
    c, tp = logits.shape

    if need_mask:
        # Ragged tail: lanes past the true pixel count hold garbage.  Push the
        # labels out of range (cheap (1,TP) select) so counts/one-hot stay
        # correct; the garbage logits are discarded by the final select below.
        blk = pl.program_id(1) * blocks_per_split + pi
        lane = lax.broadcasted_iota(jnp.int32, (1, tp), 1)
        valid = (blk * tp + lane) < hw                       # (1, TP) bool
        labels = jnp.where(valid, labels, -1)

    # Numerically stable log-sum-exp over the class (sublane) axis.
    m = jnp.max(logits, axis=0, keepdims=True)               # (1, TP)
    lse = m + jnp.log(jnp.sum(jnp.exp(logits - m), axis=0, keepdims=True))

    # One-hot via a (C,1) iota broadcast against the (1,TP) labels; labels
    # outside [0, C) (ignore_index, masked tail) match nothing.
    class_ids = lax.broadcasted_iota(jnp.int32, (c, 1), 0)    # (C, 1)
    onehot = (class_ids == labels).astype(jnp.float32)        # (C, TP)

    # Folded per-pixel CE scatter: onehot * (lse - logit_target).
    contrib = onehot * (lse - logits)                         # (C, TP)
    if need_mask:
        # Select discards any NaN/Inf produced from garbage tail lanes.
        contrib = jnp.where(valid, contrib, 0.0)

    sum_ref[...] += jnp.sum(contrib, axis=-1, keepdims=True)  # (C, 1)
    cnt_ref[...] += jnp.sum(onehot, axis=-1, keepdims=True)   # (C, 1)


def _choose_block_pixels(hw, c):
    """Pick the pixel-tile width: ~2 MiB of f32 logits per block (lane-dense,
    per-step overhead amortized) while leaving room for double-buffering plus
    several (C,TP) f32 intermediates within the 48 MiB scoped-VMEM budget
    (headroom even on v7x's 64 MiB physical VMEM)."""
    c_pad = ((max(c, 1) + 7) // 8) * 8
    tp = (2 * 1024 * 1024) // (c_pad * 4)
    tp = max(128, (tp // 128) * 128)
    tp = min(tp, 128 * 1024)
    if hw <= tp:
        return hw   # single full-dim block; allowed even if hw % 128 != 0
    return tp


@functools.partial(jax.jit, static_argnames=("ignore_index", "block_pixels"))
def ce_loss(output, labels, ignore_index=-100, block_pixels=None):
    """Pallas-backed CELoss.forward.

    output: [N, C, *spatial] float logits (NCHW or NCDHW)
    labels: [N, 1, *spatial] integer class indices
    returns: scalar float32 loss
    """
    n, c = output.shape[0], output.shape[1]
    hw = 1
    for d in output.shape[2:]:
        hw *= d

    # NCHW(+D) is already [N, C, pixels]-contiguous: pure reshape, no HBM copy.
    logits = output.reshape(n, c, hw)
    # TODO(synk): if labels arrive as int8/int16 upstream, pass them narrow and
    # widen in-kernel to cut label HBM traffic on v5e/v6e.
    labs = labels.reshape(n, 1, hw).astype(jnp.int32)

    if block_pixels is None:
        tp = _choose_block_pixels(hw, c)
    else:
        tp = block_pixels
        if tp != hw and tp % 128 != 0:
            raise ValueError(
                "block_pixels must be a multiple of 128 or equal to the pixel count")

    num_blocks = -(-hw // tp)
    # Split the pixel-block axis into two independent "parallel" halves when the
    # batch alone cannot feed both TensorCores (v7x dual-TC, batch-1 case).
    # Only split an even block count so every block index maps to a real block.
    n_splits = 2 if (n < 2 and num_blocks >= 2 and num_blocks % 2 == 0) else 1
    bps = num_blocks // n_splits
    need_mask = (hw % tp) != 0

    grid = (n, n_splits, bps)

    kernel = functools.partial(_ce_class_accum_kernel, hw=hw,
                               blocks_per_split=bps, need_mask=need_mask)

    part_sum, part_cnt = pl.pallas_call(
        kernel,
        out_shape=(
            jax.ShapeDtypeStruct((n * n_splits, c, 1), jnp.float32),
            jax.ShapeDtypeStruct((n * n_splits, c, 1), jnp.float32),
        ),
        grid_spec=pltpu.PrefetchScalarGridSpec(
            num_scalar_prefetch=0,
            grid=grid,
            in_specs=[
                pl.BlockSpec((None, c, tp),
                             lambda ni, si, pi: (ni, 0, si * bps + pi)),
                pl.BlockSpec((None, 1, tp),
                             lambda ni, si, pi: (ni, 0, si * bps + pi)),
            ],
            out_specs=(
                pl.BlockSpec((None, c, 1),
                             lambda ni, si, pi: (ni * n_splits + si, 0, 0)),
                pl.BlockSpec((None, c, 1),
                             lambda ni, si, pi: (ni * n_splits + si, 0, 0)),
            ),
        ),
        compiler_params=pltpu.CompilerParams(
            dimension_semantics=("parallel", "parallel", "arbitrary"),
            vmem_limit_bytes=48 * 1024 * 1024,
        ),
    )(logits, labs)

    # Reduce per-(batch, split) partials, then macro-average over classes present.
    class_sum = jnp.sum(part_sum[:, :, 0], axis=0)        # (C,) float32
    class_cnt = jnp.sum(part_cnt[:, :, 0], axis=0)        # (C,) float32

    class_idx = jnp.arange(c)
    valid = (class_cnt > 0) & (class_idx != ignore_index)
    cntf = jnp.maximum(class_cnt, 1.0)
    per_class_mean = jnp.where(valid, class_sum / cntf, 0.0)
    n_valid = jnp.sum(valid.astype(jnp.float32))
    # Note: if no class is valid, this divides by zero (NaN) -- same as the
    # reference PyTorch module.
    return jnp.sum(per_class_mean) / n_valid


def _ce_loss_ref(output, labels, ignore_index=-100):
    """Pure-JAX reference implementing the same semantics."""
    c = output.shape[1]
    perm = (0,) + tuple(range(2, output.ndim)) + (1,)
    logits = jnp.transpose(output, perm).reshape(-1, c).astype(jnp.float32)
    labs = jnp.transpose(labels, perm).reshape(-1).astype(jnp.int32)
    logp = jax.nn.log_softmax(logits, axis=-1)
    per_elem = -jnp.take_along_axis(logp, labs[:, None], axis=-1)[:, 0]
    loss_sum = 0.0
    n_valid = 0.0
    for i in range(c):
        mask = (labs == i).astype(jnp.float32)
        cnt = jnp.sum(mask)
        has = (cnt > 0) & (i != ignore_index)
        mean_i = jnp.where(has, jnp.sum(per_elem * mask) / jnp.maximum(cnt, 1.0), 0.0)
        loss_sum = loss_sum + mean_i
        n_valid = n_valid + has.astype(jnp.float32)
    return loss_sum / n_valid


if __name__ == "__main__":
    key = jax.random.PRNGKey(0)
    k1, k2, k3, k4, k5, k6 = jax.random.split(key, 6)

    # Case 1: shapes implied by the module spec (single full-dim block, no tail).
    N, C, H, W = 2, 4, 16, 16
    output = jax.random.normal(k1, (N, C, H, W), dtype=jnp.float32)
    labels = jax.random.randint(k2, (N, 1, H, W), 0, C, dtype=jnp.int32)
    loss = jax.block_until_ready(ce_loss(output, labels))
    ref = jax.block_until_ready(_ce_loss_ref(output, labels))
    assert jnp.allclose(loss, ref, atol=1e-4, rtol=1e-4), (loss, ref)

    # Case 2: ragged pixel count (18*18=324) with a small block, exercising the
    # in-kernel tail mask and multi-step accumulation (batch axis parallel).
    H2, W2 = 18, 18
    output2 = jax.random.normal(k3, (N, C, H2, W2), dtype=jnp.float32)
    labels2 = jax.random.randint(k4, (N, 1, H2, W2), 0, C, dtype=jnp.int32)
    loss2 = jax.block_until_ready(ce_loss(output2, labels2, block_pixels=128))
    ref2 = jax.block_until_ready(_ce_loss_ref(output2, labels2))
    assert jnp.allclose(loss2, ref2, atol=1e-4, rtol=1e-4), (loss2, ref2)

    # Case 3: batch-1 input (31*31=961, 8 blocks) exercising the dual-TC pixel
    # split (n_splits=2) together with the ragged tail mask.
    H3, W3 = 31, 31
    output3 = jax.random.normal(k5, (1, C, H3, W3), dtype=jnp.float32)
    labels3 = jax.random.randint(k6, (1, 1, H3, W3), 0, C, dtype=jnp.int32)
    loss3 = jax.block_until_ready(ce_loss(output3, labels3, block_pixels=128))
    ref3 = jax.block_until_ready(_ce_loss_ref(output3, labels3))
    assert jnp.allclose(loss3, ref3, atol=1e-4, rtol=1e-4), (loss3, ref3)

    print("KERNEL_OK")
</pallas_src>

<mosaic_0001>
module attributes {stable_mosaic.version = 11 : i64} {
  func.func @_ce_class_accum_kernel(%arg0: i32, %arg1: i32, %arg2: i32, %arg3: memref<1x4x256xf32, #tpu.memory_space<vmem>>, %arg4: memref<1x1x256xi32, #tpu.memory_space<vmem>>, %arg5: memref<1x4x1xf32, #tpu.memory_space<vmem>>, %arg6: memref<1x4x1xf32, #tpu.memory_space<vmem>>) attributes {dimension_semantics = [#tpu.dimension_semantics<parallel>, #tpu.dimension_semantics<parallel>, #tpu.dimension_semantics<arbitrary>], iteration_bounds = array<i64: 2, 1, 1>, scalar_prefetch = 0 : i64, scratch_operands = 0 : i64, tpu.core_type = #tpu.core_type<tc>, window_params = [{transform_indices = @transform_0, window_bounds = array<i64: 1, 4, 256>}, {transform_indices = @transform_1, window_bounds = array<i64: 1, 1, 256>}, {transform_indices = @transform_2, window_bounds = array<i64: 1, 4, 1>}, {transform_indices = @transform_3, window_bounds = array<i64: 1, 4, 1>}]} {
    %c0_i32 = arith.constant 0 : i32
    %0 = arith.cmpi eq, %arg2, %c0_i32 : i32
    %1 = arith.extui %0 : i1 to i32
    %c0_i32_0 = arith.constant 0 : i32
    %2 = arith.cmpi ne, %1, %c0_i32_0 : i32
    scf.if %2 {
      %cst_21 = arith.constant 0.000000e+00 : f32
      %41 = vector.broadcast %cst_21 : f32 to vector<4x1xf32>
      %c0_22 = arith.constant 0 : index
      %c0_23 = arith.constant 0 : index
      %c0_24 = arith.constant 0 : index
      %42 = vector.load %arg5[%c0_22, %c0_23, %c0_24] : memref<1x4x1xf32, #tpu.memory_space<vmem>>, vector<1x4x1xf32>
      %43 = vector.shape_cast %42 : vector<1x4x1xf32> to vector<4x1xf32>
      %44 = vector.shape_cast %41 : vector<4x1xf32> to vector<1x4x1xf32>
      tpu.vector_store %arg5[%c0_22, %c0_23, %c0_24], %44 {strides = array<i32>} : memref<1x4x1xf32, #tpu.memory_space<vmem>>, vector<1x4x1xf32>,
      %cst_25 = arith.constant 0.000000e+00 : f32
      %45 = vector.broadcast %cst_25 : f32 to vector<4x1xf32>
      %c0_26 = arith.constant 0 : index
      %c0_27 = arith.constant 0 : index
      %c0_28 = arith.constant 0 : index
      %46 = vector.load %arg6[%c0_26, %c0_27, %c0_28] : memref<1x4x1xf32, #tpu.memory_space<vmem>>, vector<1x4x1xf32>
      %47 = vector.shape_cast %46 : vector<1x4x1xf32> to vector<4x1xf32>
      %48 = vector.shape_cast %45 : vector<4x1xf32> to vector<1x4x1xf32>
      tpu.vector_store %arg6[%c0_26, %c0_27, %c0_28], %48 {strides = array<i32>} : memref<1x4x1xf32, #tpu.memory_space<vmem>>, vector<1x4x1xf32>,
    } else {
    }
    %c0 = arith.constant 0 : index
    %c0_1 = arith.constant 0 : index
    %c0_2 = arith.constant 0 : index
    %3 = vector.load %arg3[%c0, %c0_1, %c0_2] : memref<1x4x256xf32, #tpu.memory_space<vmem>>, vector<1x4x256xf32>
    %4 = vector.shape_cast %3 : vector<1x4x256xf32> to vector<4x256xf32>
    %c0_3 = arith.constant 0 : index
    %c0_4 = arith.constant 0 : index
    %c0_5 = arith.constant 0 : index
    %5 = vector.load %arg4[%c0_3, %c0_4, %c0_5] : memref<1x1x256xi32, #tpu.memory_space<vmem>>, vector<1x1x256xi32>
    %6 = vector.shape_cast %5 : vector<1x1x256xi32> to vector<1x256xi32>
    %cst = arith.constant dense<0xFF800000> : vector<256xf32>
    %7 = vector.multi_reduction <maximumf>, %4, %cst [0] : vector<4x256xf32> to vector<256xf32>
    %8 = vector.shape_cast %7 : vector<256xf32> to vector<1x256xf32>
    %9 = vector.broadcast %8 : vector<1x256xf32> to vector<4x256xf32>
    %10 = arith.subf %4, %9 : vector<4x256xf32>
    %11 = math.exp %10 : vector<4x256xf32>
    %cst_6 = arith.constant dense<0.000000e+00> : vector<256xf32>
    %12 = vector.multi_reduction <add>, %11, %cst_6 [0] : vector<4x256xf32> to vector<256xf32>
    %13 = vector.shape_cast %12 : vector<256xf32> to vector<1x256xf32>
    %14 = math.log %13 : vector<1x256xf32>
    %15 = arith.addf %8, %14 : vector<1x256xf32>
    %16 = tpu.iota {dimensions = array<i32: 0>} : vector<4x1xi32>
    %17 = vector.broadcast %16 : vector<4x1xi32> to vector<4x256xi32>
    %18 = vector.broadcast %6 : vector<1x256xi32> to vector<4x256xi32>
    %19 = arith.cmpi eq, %17, %18 : vector<4x256xi32>
    %20 = arith.extui %19 : vector<4x256xi1> to vector<4x256xi32>
    %21 = arith.sitofp %20 : vector<4x256xi32> to vector<4x256xf32>
    %22 = vector.broadcast %15 : vector<1x256xf32> to vector<4x256xf32>
    %23 = arith.subf %22, %4 : vector<4x256xf32>
    %24 = arith.mulf %21, %23 : vector<4x256xf32>
    %c0_7 = arith.constant 0 : index
    %c0_8 = arith.constant 0 : index
    %c0_9 = arith.constant 0 : index
    %25 = vector.load %arg5[%c0_7, %c0_8, %c0_9] : memref<1x4x1xf32, #tpu.memory_space<vmem>>, vector<1x4x1xf32>
    %26 = vector.shape_cast %25 : vector<1x4x1xf32> to vector<4x1xf32>
    %cst_10 = arith.constant dense<0.000000e+00> : vector<4xf32>
    %27 = vector.multi_reduction <add>, %24, %cst_10 [1] : vector<4x256xf32> to vector<4xf32>
    %28 = vector.shape_cast %27 : vector<4xf32> to vector<4x1xf32>
    %29 = arith.addf %26, %28 : vector<4x1xf32>
    %c0_11 = arith.constant 0 : index
    %c0_12 = arith.constant 0 : index
    %c0_13 = arith.constant 0 : index
    %30 = vector.load %arg5[%c0_11, %c0_12, %c0_13] : memref<1x4x1xf32, #tpu.memory_space<vmem>>, vector<1x4x1xf32>
    %31 = vector.shape_cast %30 : vector<1x4x1xf32> to vector<4x1xf32>
    %32 = vector.shape_cast %29 : vector<4x1xf32> to vector<1x4x1xf32>
    tpu.vector_store %arg5[%c0_11, %c0_12, %c0_13], %32 {strides = array<i32>} : memref<1x4x1xf32, #tpu.memory_space<vmem>>, vector<1x4x1xf32>,
    %c0_14 = arith.constant 0 : index
    %c0_15 = arith.constant 0 : index
    %c0_16 = arith.constant 0 : index
    %33 = vector.load %arg6[%c0_14, %c0_15, %c0_16] : memref<1x4x1xf32, #tpu.memory_space<vmem>>, vector<1x4x1xf32>
    %34 = vector.shape_cast %33 : vector<1x4x1xf32> to vector<4x1xf32>
    %cst_17 = arith.constant dense<0.000000e+00> : vector<4xf32>
    %35 = vector.multi_reduction <add>, %21, %cst_17 [1] : vector<4x256xf32> to vector<4xf32>
    %36 = vector.shape_cast %35 : vector<4xf32> to vector<4x1xf32>
    %37 = arith.addf %34, %36 : vector<4x1xf32>
    %c0_18 = arith.constant 0 : index
    %c0_19 = arith.constant 0 : index
    %c0_20 = arith.constant 0 : index
    %38 = vector.load %arg6[%c0_18, %c0_19, %c0_20] : memref<1x4x1xf32, #tpu.memory_space<vmem>>, vector<1x4x1xf32>
    %39 = vector.shape_cast %38 : vector<1x4x1xf32> to vector<4x1xf32>
    %40 = vector.shape_cast %37 : vector<4x1xf32> to vector<1x4x1xf32>
    tpu.vector_store %arg6[%c0_18, %c0_19, %c0_20], %40 {strides = array<i32>} : memref<1x4x1xf32, #tpu.memory_space<vmem>>, vector<1x4x1xf32>,
    return
  }
  func.func @transform_0(%arg0: i32, %arg1: i32, %arg2: i32) -> (i32, i32, i32) {
    %c1_i32 = arith.constant 1 : i32
    %0 = arith.muli %arg1, %c1_i32 : i32
    %1 = arith.addi %0, %arg2 : i32
    %c0_i32 = arith.constant 0 : i32
    %c0_i32_0 = arith.constant 0 : i32
    return %arg0, %c0_i32, %1 : i32, i32, i32
  }
  func.func @transform_1(%arg0: i32, %arg1: i32, %arg2: i32) -> (i32, i32, i32) {
    %c1_i32 = arith.constant 1 : i32
    %0 = arith.muli %arg1, %c1_i32 : i32
    %1 = arith.addi %0, %arg2 : i32
    %c0_i32 = arith.constant 0 : i32
    %c0_i32_0 = arith.constant 0 : i32
    return %arg0, %c0_i32, %1 : i32, i32, i32
  }
  func.func @transform_2(%arg0: i32, %arg1: i32, %arg2: i32) -> (i32, i32, i32) {
    %c1_i32 = arith.constant 1 : i32
    %0 = arith.muli %arg0, %c1_i32 : i32
    %1 = arith.addi %0, %arg1 : i32
    %c0_i32 = arith.constant 0 : i32
    %c0_i32_0 = arith.constant 0 : i32
    %c0_i32_1 = arith.constant 0 : i32
    return %1, %c0_i32, %c0_i32_0 : i32, i32, i32
  }
  func.func @transform_3(%arg0: i32, %arg1: i32, %arg2: i32) -> (i32, i32, i32) {
    %c1_i32 = arith.constant 1 : i32
    %0 = arith.muli %arg0, %c1_i32 : i32
    %1 = arith.addi %0, %arg1 : i32
    %c0_i32 = arith.constant 0 : i32
    %c0_i32_0 = arith.constant 0 : i32
    %c0_i32_1 = arith.constant 0 : i32
    return %1, %c0_i32, %c0_i32_0 : i32, i32, i32
  }
}

</mosaic_0001>

<bundles_post_ra>
// kernel: ce_loss.1
= control target key start
LH: loop header
LB: loop body
LE: loop exit
PB: predicated region body
PF: predicated region fallthrough
CT: control target
= control target key end

     0   :  { %s581_s12 = smov 0   ;;  %s583_s13 = smov 0   ;;  %s661_s0 = inlined_call_operand.vmem [shape: f32[2,4,256], index: 0, kind: input, shape index: {}]   ;;  %s662_s1 = inlined_call_operand.vmem [shape: s32[2,1,256], index: 1, kind: input, shape index: {}]   ;;  %s663_s2 = inlined_call_operand.vmem [shape: f32[2,4,1], index: 2, kind: output, shape index: {0}]   ;;  %s664_s3 = inlined_call_operand.vmem [shape: f32[2,4,1], index: 3, kind: output, shape index: {1}]  }
   0x1   :  { %s585_s14 = smov 0  }
   0x2 LB: > { %s33_s15 = sadd.s32 1, %s554_s13  ;;  %p493_p0 = scmp.ge.s32.totalorder %s558_s14, 1  ;;  %s558_s14 = sphi %s585_s14, %s14_s14   ;;  %s554_s13 = sphi %s583_s13, %s666_s13   ;;  %s550_s12 = sphi %s581_s12, %s665_s12  }
   0x3   : > { %p35_p1 = scmp.ge.s32.totalorder %s33_s15, 2  ;;  %p194_p2 = scmp.lt.s32.totalorder %s558_s14, 3 }
   0x5   : > { %s668_s15 = smov (%p35_p1, %s33_s15), 0  ;;  %p195_p3 = pnand %p493_p0, %p194_p2 }
   0x6   : > { %p239_p4 = scmp.lt.s32.totalorder (!%p195_p3), %s550_s12, 1 }
   0x7   : > { %198 = sbr.rel (%p195_p3) target bundleno = 236 (0xec), region = 28 }
   0xc   : > { %s670_s12 = smov (!%p239_p4, %s550_s12), 1  ;;  %vm284_vm0 = vcmask 1043456   ;;  %vm276_vm1 = vcmask 3072   ;;  %v560_v4 = vmov 0.0   ;;  %v329_v35 = vlaneseq }
   0xd   : > { %s503_s16 = sshll.u32 %s670_s12, 3  ;;  %s497_s20 = sshll.u32 %s670_s12, 2 }
   0xe   : > { %s246_s19 = scalar_lea.vmem %s661_s0, %s503_s16  ;;  %s619_s23 = scalar_lea.vmem %s663_s2, %s497_s20  ;;  %v330_v37 = vshrl.u32 %v329_v35, 7 }
   0xf   : > { %v605_v0 = vld [vmem:[%s246_s19] sm:$0xff]  ;;  %277 = vst.msk [vmem:[%s619_s23] sm:$0xf] %vm276_vm1, %v560_v4  ;;  %s496_s24 = sshll.u32 %s670_s12, 1  ;;  %s270_s30 = scalar_lea.vmem %s664_s3, %s497_s20 }
  0x10   : > { %v610_v1 = vcombine.high %v605_v0, %v605_v0  ;;  %v285_v2 = vsel %vm284_vm0, %v605_v0, -inf  ;;  %s257_s27 = scalar_lea.vmem %s662_s1, %s496_s24  ;;  %v333_v38 = vsub.s32 0, %v330_v37  ;;  %v337_v40 = vsub.s32 1, %v330_v37  ;;  %278 = vst.msk [vmem:[%s270_s30] sm:$0xf] %vm276_vm1, %v560_v4 }
  0x11   : > { %v286_v3 = vrot.slane %v285_v2, 4  ;;  %v280_v39 = vld [vmem:[%s257_s27] sm:$0x3] }
  0x12   : > { %v292_v5 = vsel %vm284_vm0, %v610_v1, -inf  ;;  %v334_v41 = vrot.slane %v280_v39, %v333_v38  ;;  %v338_v42 = vrot.slane %v280_v39, %v337_v40 }
  0x13   : > { %v287_v6 = vmax.f32 %v285_v2, %v286_v3  ;;  %v293_v7 = vrot.slane %v292_v5, 4 }
  0x14   : > { %vm339_vm2 = vcmp.eq.s32.totalorder %v330_v37, %v334_v41  ;;  %vm340_vm3 = vcmp.eq.s32.totalorder %v330_v37, %v338_v42 }
  0x15   : > { %v288_v8 = vrot.slane %v287_v6, 2  ;;  %v294_v9 = vmax.f32 %v292_v5, %v293_v7  ;;  %v499_v48 = vsel %vm339_vm2, 1.0, %v560_v4  ;;  %v500_v51 = vsel %vm340_vm3, 1.0, %v560_v4 }
  0x16   : > { %v359_v57 = vsel %vm284_vm0, %v499_v48, 0.0  ;;  %v360_v58 = vsel %vm284_vm0, %v500_v51, 0.0  ;;  %v349_v61 = vld [vmem:[%s619_s23] sm:$0xf] }
  0x17   : > { %v289_v10 = vmax.f32 %v287_v6, %v288_v8  ;;  %v295_v11 = vrot.slane %v294_v9, 2  ;;  %v361_v60 = vadd.f32 %v360_v58, %v359_v57 }
  0x19   : > { %v290_v12 = vrot.slane %v289_v10, 1  ;;  %v296_v13 = vmax.f32 %v294_v9, %v295_v11 }
  0x1b   : > { %v291_v14 = vmax.f32 %v289_v10, %v290_v12  ;;  %v297_v15 = vrot.slane %v296_v13, 1 }
  0x1d   : > { %v298_v16 = vmax.f32 %v296_v13, %v297_v15 }
  0x1f   : > { %v301_v17 = vcombine.low %v291_v14, %v298_v16 }
  0x21   : > { %v303_v18 = vsub.f32 %v605_v0, %v301_v17 }
  0x23   : > { %v304_v19 = vmul.f32 1.442695, %v303_v18 }
  0x25   : > { %530 = vpow2.f32 %v304_v19 }
  0x32   : > { %v531_v20 = vpop.eup %530 }
  0x33   : > { %v307_v21 = vcombine.high %v531_v20, %v531_v20  ;;  %v309_v22 = vsel %vm284_vm0, %v531_v20, 0.0 }
  0x34   : > { %v310_v23 = vrot.slane %v309_v22, 4 }
  0x35   : > { %v316_v24 = vsel %vm284_vm0, %v307_v21, 0.0 }
  0x36   : > { %v311_v25 = vadd.f32 %v310_v23, %v309_v22  ;;  %v317_v26 = vrot.slane %v316_v24, 4 }
  0x38   : > { %v312_v27 = vrot.slane %v311_v25, 2  ;;  %v318_v28 = vadd.f32 %v317_v26, %v316_v24 }
  0x3a   : > { %v313_v29 = vadd.f32 %v312_v27, %v311_v25  ;;  %v319_v30 = vrot.slane %v318_v28, 2 }
  0x3c   : > { %v314_v31 = vrot.slane %v313_v29, 1  ;;  %v320_v32 = vadd.f32 %v319_v30, %v318_v28 }
  0x3e   : > { %v315_v33 = vadd.f32 %v314_v31, %v313_v29  ;;  %v321_v34 = vrot.slane %v320_v32, 1 }
  0x40   : > { %v322_v36 = vadd.f32 %v321_v34, %v320_v32  ;;  %532 = vlog2.f32 %v315_v33 }
  0x42   : > { %534 = vlog2.f32 %v322_v36 }
  0x4d   : > { %v533_v43 = vpop.eup %532 }
  0x4e   : > { %v324_v44 = vmul.f32 0.6931472, %v533_v43 }
  0x4f   : > { %v535_v45 = vpop.eup %534 }
  0x50   : > { %v326_v46 = vmul.f32 0.6931472, %v535_v45  ;;  %v327_v47 = vadd.f32 %v324_v44, %v291_v14 }
  0x52   : > { %v328_v49 = vadd.f32 %v326_v46, %v298_v16  ;;  %v345_v50 = vsub.f32 %v327_v47, %v605_v0  ;;  %v358_v0 = vld [vmem:[%s270_s30] sm:$0xf] }
  0x54   : > { %v346_v52 = vsub.f32 %v328_v49, %v610_v1  ;;  %v347_v53 = vmul.f32 %v499_v48, %v345_v50 }
  0x56   : > { %v348_v54 = vmul.f32 %v500_v51, %v346_v52  ;;  %v350_v55 = vsel %vm284_vm0, %v347_v53, 0.0 }
  0x58   : > { %v351_v56 = vsel %vm284_vm0, %v348_v54, 0.0 }
  0x59   : > { %v352_v59 = vadd.f32 %v351_v56, %v350_v55 }
  0x5b   : > { %353 = vadd.xlane.f32.xlu0 %v352_v59 }
  0x5f   : > { %362 = vadd.xlane.f32.xlu0 %v361_v60 }
  0xe4   : > { %v354_v62 = vpop.xlane.xlu0 %353 }
  0xe5   : > { %v355_v63 = vadd.f32 %v354_v62, %v349_v61 }
  0xe7   : > { %357 = vst.msk [vmem:[%s619_s23] sm:$0xf] %vm276_vm1, %v355_v63 }
  0xe8   : > { %v363_v1 = vpop.xlane.xlu0 %362 }
  0xe9   : > { %v364_v2 = vadd.f32 %v363_v1, %v358_v0 }
  0xeb   : > { %365 = vst.msk [vmem:[%s270_s30] sm:$0xf] %vm276_vm1, %v364_v2 }
  0xec PF: > { %s14_s14 = sadd.s32 1, %s558_s14   ;;  %s665_s12 = smov %s554_s13 }
  0xed   : > { %p11_p5 = scmp.ge.s32.totalorder %s14_s14, 4   ;;  %s666_s13 = smov %s668_s15 }
  0xef   :  { %13 = sbr.rel (!%p11_p5) target bundleno = 2 (0x2), region = 77 }

</bundles_post_ra>
